<compile_context>
chip_gen: v7x
topology: tpu7x:2x2x1
jax: 0.10.0
libtpu: 0.0.40
codegen_flags: <defaults>
</compile_context>

<pallas_src>
import functools

import numpy as np
import jax
import jax.numpy as jnp
from jax.experimental import pallas as pl
from jax.experimental.pallas import tpu as pltpu

KERNEL_SIZE = 15
THRESHOLD = 0.6
ITERATIONS = 1


def _round_up(x: int, m: int) -> int:
    return ((x + m - 1) // m) * m


def _soft_erosion_weight_np(kernel_size: int) -> np.ndarray:
    """Deterministic weight, same construction as SoftErosion.__init__."""
    r = kernel_size // 2
    y_idx, x_idx = np.meshgrid(
        np.arange(float(kernel_size)), np.arange(float(kernel_size)), indexing="ij"
    )
    dist = np.sqrt((x_idx - r) ** 2 + (y_idx - r) ** 2)
    kernel = dist.max() - dist
    kernel = kernel / kernel.sum()
    return kernel.astype(np.float32)  # (k, k)


def _make_toeplitz_bands(kernel_size: int, W: int, WL: int) -> jnp.ndarray:
    """Flattened constant band matrix so the whole conv is one matmul.

    T[dy*W + p, j] = w[dy, p - j + r] when |p - j| <= r, else 0; output
    columns j >= W (lane padding) are zero.  The conv's zero padding in the
    x-direction is implicit (out-of-range source columns never appear in the
    contraction).
    """
    w = _soft_erosion_weight_np(kernel_size)
    r = kernel_size // 2
    T = np.zeros((kernel_size, W, WL), dtype=np.float32)
    for dy in range(kernel_size):
        for j in range(W):
            for dx in range(kernel_size):
                p = j + dx - r
                if 0 <= p < W:
                    T[dy, p, j] = w[dy, dx]
    return jnp.asarray(T.reshape(kernel_size * W, WL))


def _conv_kernel(*refs, H, W, HL, WL, HPL, k, r, R0, threshold,
                 has_prev, emit_min):
    """Per-image conv as a single MXU matmul + max over sub-threshold outputs.

    refs (in order): x (1,H,W) f32, [prev (1,HL,WL) f32], T (k*W, WL) f32,
                     y (1,HL,WL) f32, nmax (1,1,1) f32, [xmin (1,H,W) f32],
                     xpad scratch (HPL, W) f32.
    """
    it = iter(refs)
    x_ref = next(it)
    prev_ref = next(it) if has_prev else None
    t_ref = next(it)
    y_ref = next(it)
    nmax_ref = next(it)
    xmin_ref = next(it) if emit_min else None
    xpad_ref = next(it)

    # Zero only the halo rows of the scratch (cheap: ~2r rows instead of the
    # whole (HPL, W) buffer).  Done every grid step rather than once under
    # pl.when(program_id == 0): with the batch axis marked "parallel" a
    # second TensorCore has its own scratch and never runs step 0.
    if R0 > 0:
        xpad_ref[:R0, :] = jnp.zeros((R0, W), jnp.float32)
    if HPL - R0 - H > 0:
        xpad_ref[R0 + H:, :] = jnp.zeros((HPL - R0 - H, W), jnp.float32)

    img = x_ref[0]
    if has_prev:
        # Fused inter-iteration erosion step: x <- min(x, conv_prev(x)),
        # done here instead of an extra XLA pass over HBM.
        img = jnp.minimum(img, prev_ref[0, :H, :W])
    xpad_ref[R0:R0 + H, :] = img
    if emit_min:
        xmin_ref[0] = img  # eroded image needed by the *next* fused pass

    # Single MXU matmul: stack the k row-shifted views along the contraction
    # axis (K = k*W) against the flattened Toeplitz band matrix (k*W, WL).
    # All dx (lane) shifts live inside the constant matrix.
    lhs = jnp.concatenate(
        [xpad_ref[dy + R0 - r: dy + R0 - r + HL, :] for dy in range(k)],
        axis=1)                                             # (HL, k*W)
    acc = jnp.dot(lhs, t_ref[...], preferred_element_type=jnp.float32)
    y_ref[0] = acc                                          # lane-dense store

    # Per-image max over sub-threshold conv outputs, restricted to the valid
    # (H, W) region via a static slice (no iota mask).
    v = acc[:H, :W]
    below = jnp.where(v < threshold, v, -jnp.inf)
    nmax_ref[...] = jnp.max(below).reshape(1, 1, 1)


def _normalize_kernel(inv_ref, y_ref, out_ref, mask_ref, *, threshold):
    """Fused mask + normalize on lane-dense padded tiles.

    out = 1 where y >= thr else y * (1/denom); mask = (y >= thr) as int8.
    Values in the lane/sublane padding are garbage and cropped in the wrapper.
    """
    y = y_ref[0]
    ge = y >= threshold
    inv = inv_ref[0]
    out_ref[0] = jnp.where(ge, jnp.float32(1.0), y * inv)
    mask_ref[0] = ge.astype(jnp.int8)


def _conv_pass(x_img, prev_y, t_flat, *, H, W, HL, WL, HPL, k, r, R0,
               threshold, emit_min):
    N = x_img.shape[0]
    has_prev = prev_y is not None

    in_specs = [pl.BlockSpec((1, H, W), lambda b: (b, 0, 0))]
    inputs = [x_img]
    if has_prev:
        in_specs.append(pl.BlockSpec((1, HL, WL), lambda b: (b, 0, 0)))
        inputs.append(prev_y)
    # Grid-invariant Toeplitz constant (block index never changes, so the
    # pipeline fetches it once).
    in_specs.append(pl.BlockSpec((k * W, WL), lambda b: (0, 0)))
    inputs.append(t_flat)

    out_shape = [jax.ShapeDtypeStruct((N, HL, WL), jnp.float32),
                 jax.ShapeDtypeStruct((N, 1, 1), jnp.float32)]
    out_specs = [pl.BlockSpec((1, HL, WL), lambda b: (b, 0, 0)),
                 pl.BlockSpec((1, 1, 1), lambda b: (b, 0, 0))]
    if emit_min:
        out_shape.append(jax.ShapeDtypeStruct((N, H, W), jnp.float32))
        out_specs.append(pl.BlockSpec((1, H, W), lambda b: (b, 0, 0)))

    outs = pl.pallas_call(
        functools.partial(_conv_kernel, H=H, W=W, HL=HL, WL=WL, HPL=HPL,
                          k=k, r=r, R0=R0, threshold=threshold,
                          has_prev=has_prev, emit_min=emit_min),
        out_shape=tuple(out_shape),
        grid_spec=pltpu.PrefetchScalarGridSpec(
            num_scalar_prefetch=0,
            grid=(N,),
            in_specs=in_specs,
            out_specs=tuple(out_specs),
            scratch_shapes=[pltpu.VMEM((HPL, W), jnp.float32)],
        ),
        compiler_params=pltpu.CompilerParams(
            dimension_semantics=("parallel",)),
    )(*inputs)

    y, nmax = outs[0], outs[1]
    xmin = outs[2] if emit_min else None
    return y, nmax, xmin


def soft_erosion(x, *, kernel_size=KERNEL_SIZE, threshold=THRESHOLD,
                 iterations=ITERATIONS):
    """JAX/Pallas port of SoftErosion.forward.  x: (N, 1, H, W) float32."""
    N, C, H, W = x.shape
    assert C == 1, "SoftErosion's grouped conv only supports C == 1"
    assert iterations >= 1
    r = kernel_size // 2
    HL = _round_up(H, 8)             # sublane-padded output rows
    WL = _round_up(W, 128)           # lane-dense output width
    R0 = _round_up(r, 8)             # 8-aligned row offset for in-kernel padding
    HPL = _round_up(R0 + HL + r, 8)  # scratch rows

    t_flat = _make_toeplitz_bands(kernel_size, W, WL)  # (k*W, WL) constant
    x_img = x[:, 0].astype(jnp.float32)                # (N, H, W)

    prev_y = None
    y = nmax = None
    for it in range(iterations):
        # emit_min: this pass's eroded image is needed by a *later* pass.
        emit_min = (1 <= it < iterations - 1)
        y, nmax, xmin = _conv_pass(
            x_img, prev_y, t_flat, H=H, W=W, HL=HL, WL=WL, HPL=HPL,
            k=kernel_size, r=r, R0=R0, threshold=threshold, emit_min=emit_min)
        if emit_min:
            x_img = xmin
        prev_y = y

    # Global max over all sub-threshold values (matches x[~mask].max()) + eps,
    # passed as a reciprocal so the normalize is a multiply.
    # NOTE: if every pixel is >= threshold this is 1/-inf = -0.0 (PyTorch would
    # raise on an empty max); mask is then all-True and out all 1.0 -> benign.
    inv_denom = (jnp.float32(1.0) /
                 (jnp.max(nmax) + jnp.float32(1e-7))).reshape(1).astype(jnp.float32)

    out_p, mask_p = pl.pallas_call(
        functools.partial(_normalize_kernel, threshold=threshold),
        out_shape=(
            jax.ShapeDtypeStruct((N, HL, WL), jnp.float32),
            jax.ShapeDtypeStruct((N, HL, WL), jnp.int8),
        ),
        grid_spec=pltpu.PrefetchScalarGridSpec(
            num_scalar_prefetch=0,
            grid=(N,),
            in_specs=[
                pl.BlockSpec(memory_space=pltpu.MemorySpace.SMEM),  # 1/denom
                pl.BlockSpec((1, HL, WL), lambda b: (b, 0, 0)),     # conv output
            ],
            out_specs=(
                pl.BlockSpec((1, HL, WL), lambda b: (b, 0, 0)),
                pl.BlockSpec((1, HL, WL), lambda b: (b, 0, 0)),
            ),
        ),
        compiler_params=pltpu.CompilerParams(dimension_semantics=("parallel",)),
    )(inv_denom, y)

    out = out_p[:, :H, :W].reshape(N, 1, H, W)
    mask = (mask_p[:, :H, :W] > 0).reshape(N, 1, H, W)
    return out, mask


def _reference(x, *, kernel_size, threshold, iterations):
    """Pure-JAX reference mirroring the PyTorch forward (for validation)."""
    r = kernel_size // 2
    w = jnp.asarray(_soft_erosion_weight_np(kernel_size)).reshape(
        1, 1, kernel_size, kernel_size)

    def conv(z):
        return jax.lax.conv_general_dilated(
            z, w, window_strides=(1, 1), padding=((r, r), (r, r)),
            dimension_numbers=("NCHW", "OIHW", "NCHW"),
            precision=jax.lax.Precision.HIGHEST)

    for _ in range(iterations - 1):
        x = jnp.minimum(x, conv(x))
    y = conv(x)
    mask = y >= threshold
    below_max = jnp.max(jnp.where(mask, -jnp.inf, y))
    out = jnp.where(mask, 1.0, y / (below_max + 1e-7))
    return out, mask


if __name__ == "__main__":
    key = jax.random.PRNGKey(0)
    N, C, H, W = 2, 1, 32, 32
    x = jax.random.uniform(key, (N, C, H, W), dtype=jnp.float32)

    # iterations=1 is the module default; iterations=3 exercises the fused
    # inter-iteration min and the emit_min output path.
    for iters in (1, 3):
        out, mask = soft_erosion(x, iterations=iters)
        out = jax.block_until_ready(out)
        mask = jax.block_until_ready(mask)

        ref_out, ref_mask = _reference(
            x, kernel_size=KERNEL_SIZE, threshold=THRESHOLD, iterations=iters)

        out_np, mask_np = np.asarray(out), np.asarray(mask)
        ref_out_np, ref_mask_np = np.asarray(ref_out), np.asarray(ref_mask)

        # Tolerate (extremely unlikely) mask flips exactly at the threshold
        # boundary caused by differing conv accumulation orders (MXU vs lax).
        agree = mask_np == ref_mask_np
        assert agree.mean() > 0.99, f"mask mismatch vs reference (iterations={iters})"
        np.testing.assert_allclose(out_np[agree], ref_out_np[agree],
                                   atol=3e-5, rtol=3e-5)
        assert out_np.shape == (N, C, H, W)
        assert mask_np.shape == (N, C, H, W) and mask_np.dtype == np.bool_

    print("KERNEL_OK")
</pallas_src>

<mosaic_0001>
module attributes {stable_mosaic.version = 11 : i64} {
  func.func @_conv_kernel(%arg0: i32, %arg1: memref<1x32x32xf32, #tpu.memory_space<vmem>>, %arg2: memref<480x128xf32, #tpu.memory_space<vmem>>, %arg3: memref<1x32x128xf32, #tpu.memory_space<vmem>>, %arg4: memref<1x1x1xf32, #tpu.memory_space<vmem>>, %arg5: memref<48x32xf32, #tpu.memory_space<vmem>>) attributes {dimension_semantics = [#tpu.dimension_semantics<parallel>], iteration_bounds = array<i64: 2>, scalar_prefetch = 0 : i64, scratch_operands = 1 : i64, tpu.core_type = #tpu.core_type<tc>, window_params = [{transform_indices = @transform_0, window_bounds = array<i64: 1, 32, 32>}, {pipeline_mode = #tpu.pipeline_mode<synchronous>, transform_indices = @transform_1, window_bounds = array<i64: 480, 128>}, {transform_indices = @transform_2, window_bounds = array<i64: 1, 32, 128>}, {transform_indices = @transform_3, window_bounds = array<i64: 1, 1, 1>}]} {
    %cst = arith.constant 0.000000e+00 : f32
    %0 = vector.broadcast %cst : f32 to vector<8x32xf32>
    %c0 = arith.constant 0 : index
    %c0_0 = arith.constant 0 : index
    %1 = vector.load %arg5[%c0, %c0_0] : memref<48x32xf32, #tpu.memory_space<vmem>>, vector<8x32xf32>
    tpu.vector_store %arg5[%c0, %c0_0], %0 {strides = array<i32>} : memref<48x32xf32, #tpu.memory_space<vmem>>, vector<8x32xf32>,
    %cst_1 = arith.constant 0.000000e+00 : f32
    %2 = vector.broadcast %cst_1 : f32 to vector<8x32xf32>
    %c40 = arith.constant 40 : index
    %c0_2 = arith.constant 0 : index
    %3 = vector.load %arg5[%c40, %c0_2] : memref<48x32xf32, #tpu.memory_space<vmem>>, vector<8x32xf32>
    tpu.vector_store %arg5[%c40, %c0_2], %2 {strides = array<i32>} : memref<48x32xf32, #tpu.memory_space<vmem>>, vector<8x32xf32>,
    %c0_3 = arith.constant 0 : index
    %c0_4 = arith.constant 0 : index
    %c0_5 = arith.constant 0 : index
    %4 = vector.load %arg1[%c0_3, %c0_4, %c0_5] : memref<1x32x32xf32, #tpu.memory_space<vmem>>, vector<1x32x32xf32>
    %5 = vector.shape_cast %4 : vector<1x32x32xf32> to vector<32x32xf32>
    %c8 = arith.constant 8 : index
    %c0_6 = arith.constant 0 : index
    %6 = vector.load %arg5[%c8, %c0_6] : memref<48x32xf32, #tpu.memory_space<vmem>>, vector<32x32xf32>
    tpu.vector_store %arg5[%c8, %c0_6], %5 {strides = array<i32>} : memref<48x32xf32, #tpu.memory_space<vmem>>, vector<32x32xf32>,
    %c1 = arith.constant 1 : index
    %c0_7 = arith.constant 0 : index
    %7 = vector.load %arg5[%c1, %c0_7] : memref<48x32xf32, #tpu.memory_space<vmem>>, vector<32x32xf32>
    %c2 = arith.constant 2 : index
    %c0_8 = arith.constant 0 : index
    %8 = vector.load %arg5[%c2, %c0_8] : memref<48x32xf32, #tpu.memory_space<vmem>>, vector<32x32xf32>
    %c3 = arith.constant 3 : index
    %c0_9 = arith.constant 0 : index
    %9 = vector.load %arg5[%c3, %c0_9] : memref<48x32xf32, #tpu.memory_space<vmem>>, vector<32x32xf32>
    %c4 = arith.constant 4 : index
    %c0_10 = arith.constant 0 : index
    %10 = vector.load %arg5[%c4, %c0_10] : memref<48x32xf32, #tpu.memory_space<vmem>>, vector<32x32xf32>
    %c5 = arith.constant 5 : index
    %c0_11 = arith.constant 0 : index
    %11 = vector.load %arg5[%c5, %c0_11] : memref<48x32xf32, #tpu.memory_space<vmem>>, vector<32x32xf32>
    %c6 = arith.constant 6 : index
    %c0_12 = arith.constant 0 : index
    %12 = vector.load %arg5[%c6, %c0_12] : memref<48x32xf32, #tpu.memory_space<vmem>>, vector<32x32xf32>
    %c7 = arith.constant 7 : index
    %c0_13 = arith.constant 0 : index
    %13 = vector.load %arg5[%c7, %c0_13] : memref<48x32xf32, #tpu.memory_space<vmem>>, vector<32x32xf32>
    %c8_14 = arith.constant 8 : index
    %c0_15 = arith.constant 0 : index
    %14 = vector.load %arg5[%c8_14, %c0_15] : memref<48x32xf32, #tpu.memory_space<vmem>>, vector<32x32xf32>
    %c9 = arith.constant 9 : index
    %c0_16 = arith.constant 0 : index
    %15 = vector.load %arg5[%c9, %c0_16] : memref<48x32xf32, #tpu.memory_space<vmem>>, vector<32x32xf32>
    %c10 = arith.constant 10 : index
    %c0_17 = arith.constant 0 : index
    %16 = vector.load %arg5[%c10, %c0_17] : memref<48x32xf32, #tpu.memory_space<vmem>>, vector<32x32xf32>
    %c11 = arith.constant 11 : index
    %c0_18 = arith.constant 0 : index
    %17 = vector.load %arg5[%c11, %c0_18] : memref<48x32xf32, #tpu.memory_space<vmem>>, vector<32x32xf32>
    %c12 = arith.constant 12 : index
    %c0_19 = arith.constant 0 : index
    %18 = vector.load %arg5[%c12, %c0_19] : memref<48x32xf32, #tpu.memory_space<vmem>>, vector<32x32xf32>
    %c13 = arith.constant 13 : index
    %c0_20 = arith.constant 0 : index
    %19 = vector.load %arg5[%c13, %c0_20] : memref<48x32xf32, #tpu.memory_space<vmem>>, vector<32x32xf32>
    %c14 = arith.constant 14 : index
    %c0_21 = arith.constant 0 : index
    %20 = vector.load %arg5[%c14, %c0_21] : memref<48x32xf32, #tpu.memory_space<vmem>>, vector<32x32xf32>
    %c15 = arith.constant 15 : index
    %c0_22 = arith.constant 0 : index
    %21 = vector.load %arg5[%c15, %c0_22] : memref<48x32xf32, #tpu.memory_space<vmem>>, vector<32x32xf32>
    %22 = tpu.concatenate %7, %8, %9, %10, %11, %12, %13, %14, %15, %16, %17, %18, %19, %20, %21 in 1 : vector<32x32xf32>, vector<32x32xf32>, vector<32x32xf32>, vector<32x32xf32>, vector<32x32xf32>, vector<32x32xf32>, vector<32x32xf32>, vector<32x32xf32>, vector<32x32xf32>, vector<32x32xf32>, vector<32x32xf32>, vector<32x32xf32>, vector<32x32xf32>, vector<32x32xf32>, vector<32x32xf32> -> vector<32x480xf32>
    %c0_23 = arith.constant 0 : index
    %c0_24 = arith.constant 0 : index
    %23 = vector.load %arg2[%c0_23, %c0_24] : memref<480x128xf32, #tpu.memory_space<vmem>>, vector<480x128xf32>
    %cst_25 = arith.constant dense<0.000000e+00> : vector<32x128xf32>
    %24 = tpu.matmul %22, %23, %cst_25 {dimension_numbers = #tpu.dot_dimension_numbers<[1], [0], [0], [1], [0, 0, 1, 1], [], []>} : vector<32x480xf32>, vector<480x128xf32>, vector<32x128xf32> -> vector<32x128xf32>
    %c0_26 = arith.constant 0 : index
    %c0_27 = arith.constant 0 : index
    %c0_28 = arith.constant 0 : index
    %25 = vector.load %arg3[%c0_26, %c0_27, %c0_28] : memref<1x32x128xf32, #tpu.memory_space<vmem>>, vector<1x32x128xf32>
    %26 = vector.shape_cast %25 : vector<1x32x128xf32> to vector<32x128xf32>
    %27 = vector.shape_cast %24 : vector<32x128xf32> to vector<1x32x128xf32>
    tpu.vector_store %arg3[%c0_26, %c0_27, %c0_28], %27 {strides = array<i32>} : memref<1x32x128xf32, #tpu.memory_space<vmem>>, vector<1x32x128xf32>,
    %28 = vector.extract_strided_slice %24 {offsets = [0, 0], sizes = [32, 32], strides = [1, 1]} : vector<32x128xf32> to vector<32x32xf32>
    %cst_29 = arith.constant 6.000000e-01 : f32
    %29 = vector.broadcast %cst_29 : f32 to vector<32x32xf32>
    %30 = arith.cmpf olt, %28, %29 : vector<32x32xf32>
    %cst_30 = arith.constant 0xFF800000 : f32
    %31 = vector.broadcast %cst_30 : f32 to vector<32x32xf32>
    %32 = arith.select %30, %28, %31 : vector<32x32xi1>, vector<32x32xf32>
    %33 = vector.shape_cast %32 : vector<32x32xf32> to vector<1x32x32xf32>
    %cst_31 = arith.constant dense<0xFF800000> : vector<1xf32>
    %34 = vector.multi_reduction <maximumf>, %33, %cst_31 [1, 2] : vector<1x32x32xf32> to vector<1xf32>
    %35 = vector.shape_cast %34 : vector<1xf32> to vector<1x1x1xf32>
    %36 = vector.extract %35[0, 0, 0] : f32 from vector<1x1x1xf32>
    %37 = vector.broadcast %36 : f32 to vector<1x1x1xf32>
    %c0_32 = arith.constant 0 : index
    %c0_33 = arith.constant 0 : index
    %c0_34 = arith.constant 0 : index
    %38 = vector.load %arg4[%c0_32, %c0_33, %c0_34] : memref<1x1x1xf32, #tpu.memory_space<vmem>>, vector<1x1x1xf32>
    tpu.vector_store %arg4[%c0_32, %c0_33, %c0_34], %37 {strides = array<i32>} : memref<1x1x1xf32, #tpu.memory_space<vmem>>, vector<1x1x1xf32>,
    return
  }
  func.func @transform_0(%arg0: i32) -> (i32, i32, i32) {
    %c0_i32 = arith.constant 0 : i32
    %c0_i32_0 = arith.constant 0 : i32
    %c0_i32_1 = arith.constant 0 : i32
    return %arg0, %c0_i32, %c0_i32_0 : i32, i32, i32
  }
  func.func @transform_1(%arg0: i32) -> (i32, i32) {
    %c0_i32 = arith.constant 0 : i32
    %c0_i32_0 = arith.constant 0 : i32
    %c0_i32_1 = arith.constant 0 : i32
    return %c0_i32, %c0_i32_0 : i32, i32
  }
  func.func @transform_2(%arg0: i32) -> (i32, i32, i32) {
    %c0_i32 = arith.constant 0 : i32
    %c0_i32_0 = arith.constant 0 : i32
    %c0_i32_1 = arith.constant 0 : i32
    return %arg0, %c0_i32, %c0_i32_0 : i32, i32, i32
  }
  func.func @transform_3(%arg0: i32) -> (i32, i32, i32) {
    %c0_i32 = arith.constant 0 : i32
    %c0_i32_0 = arith.constant 0 : i32
    %c0_i32_1 = arith.constant 0 : i32
    return %arg0, %c0_i32, %c0_i32_0 : i32, i32, i32
  }
}

</mosaic_0001>

<bundles_post_ra>
// kernel: tpu_custom_call.1
= control target key start
LH: loop header
LB: loop body
LE: loop exit
PB: predicated region body
PF: predicated region fallthrough
CT: control target
= control target key end

     0   :  { %9 = vsyncpa [#allocation4], 0  ;;  %s1524_s0 = inlined_call_operand.hbm [shape: f32[2,32,32], index: 0, kind: input, shape index: {}]   ;;  %s1525_s1 = inlined_call_operand.hbm [shape: f32[480,128], index: 1, kind: input, shape index: {}]   ;;  %s1526_s2 = inlined_call_operand.hbm [shape: f32[2,32,128], index: 2, kind: output, shape index: {0}]   ;;  %s1527_s3 = inlined_call_operand.vmem [shape: f32[2,1,1], index: 3, kind: output, shape index: {1}]  }
   0x1   :  { %11 = vsyncpa [#allocation4 + $0x1], 0 }
   0x2   :  { %12 = vsyncpa [#allocation7], 0 }
   0x3   :  { %13 = vsyncpa [#allocation5], 0 }
   0x4   :  { %15 = vsyncpa [#allocation5 + $0x1], 0  ;;  %s1225_s12 = smov 0   ;;  %s1227_s13 = smov 0  }
   0x5   :  { %s1229_s14 = smov 0   ;;  %s1231_s15 = smov 0  }
   0x6 LB: > { %s1246_s16 = sadd.s32 4294967295, %s1191_s15   ;;  %s805_s17 = sadd.s32 4294967294, %s1191_s15   ;;  %s1191_s15 = sphi %s1231_s15, %s1547_s15   ;;  %s1187_s14 = sphi %s1229_s14, %s1546_s14   ;;  %s1183_s13 = sphi %s1227_s13, %s1545_s13   ;;  %s1179_s12 = sphi %s1225_s12, %s1544_s12  }
   0x7   : > { %p41_p0 = scmp.ne.s32.totalorder %s1183_s13, %s1179_s12  ;;  %p1528_p1 = scmp.eq.s32.totalorder %s1246_s16, 0 }
   0x8   : > { %p92_p3 = scmp.eq.s32.totalorder %s805_s17, 1  ;;  %p806_p5 = scmp.ge.s32.totalorder %s1191_s15, 1 }
   0x9   : > { %p1255_p4 = por %p1528_p1, %p41_p0  ;;  %p125_p7 = scmp.lt.s32.totalorder %s1191_s15, 3 }
   0xa   : > { %p1260_p6 = por %p92_p3, %p41_p0  ;;  %s1193_s21 = smov [#allocation6]  }
   0xb   : > { %s1531_s18 = scalar_select %p1255_p4, 1, 0 }
   0xc   : > { %s1532_s19 = scalar_select %p1260_p6, 1, 0 }
   0xd   : > { %p1265_p8 = pnand %p806_p5, %p125_p7  ;;  %s137_s22 = sshll.u32 %s1193_s21, 4  ;;  %s1269_s22 = int_to_ptr.vmem [resolvable:$true] %s137_s22 }
   0xe   : > { %s1281_s24 = sadd.s32 1, %s1191_s15   ;;  %s28_s25 = sadd.s32 1, %s1187_s14 }
   0xf   : > { %s1533_s20 = scalar_select %p1265_p8, 1, 0 }
  0x10   : > { %p955_p9 = pneg %p1265_p8  ;;  %s25_s26 = ssub.s32 %s1191_s15, %s1281_s24 }
  0x11   : > { %s1063_s29 = scalar_lea.hbm %s1525_s1, 7680 }
  0x12   : > { %p1276_p11 = pnand %p955_p9, %p1528_p1  ;;  %p1064_p12 = scmp.ne.s32.totalorder %s1525_s1, %s1063_s29 }
  0x13   : > { %p1070_p5 = scmp.lt.u32.totalorder %s1063_s29, %s1525_s1 }
  0x14   : > { %p1065_p13 = pneg %p1276_p11 }
  0x16   : > { %p1066_p0 = pnand %p1065_p13, %p1064_p12 }
  0x18   : > { %p1067_p3 = pneg %p1066_p0 }
  0x1a   : > { %p1072_p7 = pnand %p1070_p5, %p1067_p3 }
  0x1c   : > { %1075 = shalt.err (!%p1072_p7)
}
  0x1d   : > { %s1076_s7 = scalar_lea.vmem %s1269_s22, 7680  ;;  %p1084_p2 = scmp.lt.s32.totalorder %s1269_s22, %s1269_s22 }
  0x1e   : > { %p1077_p9 = scmp.ne.s32.totalorder %s1269_s22, %s1076_s7  ;;  %p1085_p6 = scmp.lt.s32.totalorder %s1076_s7, %s1076_s7 }
  0x20   : > { %p1079_p10 = pnand %p1077_p9, %p1065_p13  ;;  %p1086_p4 = por %p1085_p6, %p1084_p2 }
  0x22   : > { %p1080_p1 = pneg %p1079_p10 }
  0x24   : > { %p1087_p8 = pnand %p1086_p4, %p1080_p1 }
  0x26   : > { %1090 = shalt.err (!%p1087_p8)
}
  0x27   : > { %s1194_s8 = smov 128   ;;  %s1195_s9 = smov 8  }
  0x28   : > { %958 = dma.hbm_to_vmem [thread:$0]  (!%p1276_p11), %s1525_s1, 7680, %s1269_s22, [#allocation7], %s1194_s8, %s1194_s8, %s1195_s9  }
  0x29   : > { %p26_p1 = scmp.eq.s32.totalorder %s25_s26, 0  ;;  %p35_p2 = scmp.ne.s32.totalorder %s1187_s14, %s1183_s13 }
  0x2a   : > { %p36_p4 = scmp.eq.s32.totalorder %s1191_s15, 0  ;;  %p968_p6 = scmp.lt.s32.totalorder %s1191_s15, 2 }
  0x2b   : > { %s1315_s17 = scalar_select %p26_p1, %s1187_s14, %s28_s25  }
  0x2c   : > { %p37_p8 = por %p36_p4, %p35_p2  ;;  %p1535_p10 = scmp.eq.s32.totalorder %s1246_s16, 1 }
  0x2d   : > { %s151_s23 = sand.u32 1, %s1187_s14   ;;  %s825_s27 = sshll.u32 %s1191_s15, 9 }
  0x2e   : > { %p1319_p12 = por %p1535_p10, %p35_p2  ;;  %s809_s28 = sshll.u32 %s151_s23, 5 }
  0x2f   : > { %s1328_s4 = scalar_lea.hbm %s1524_s0, %s825_s27  ;;  %s155_s22 = scalar_lea.vmem [#allocation3], %s809_s28 }
  0x30   : > { %s162_s25 = sshll.u32 %s155_s22, 4  ;;  %p1330_p11 = pnand %p968_p6, %p37_p8  ;;  %s1334_s25 = int_to_ptr.vmem [resolvable:$true] %s162_s25 }
  0x31   : > { %s1336_s5 = scalar_lea.sflag [#allocation4], %s151_s23  ;;  %s1091_s6 = scalar_lea.hbm %s1328_s4, 512 }
  0x32   : > { %p1092_p13 = scmp.ne.s32.totalorder %s1328_s4, %s1091_s6  ;;  %p1093_p0 = pneg %p1330_p11 }
  0x33   : > { %s1096_s11 = scalar_lea.hbm %s1524_s0, 1024  ;;  %p1097_p7 = scmp.lt.u32.totalorder %s1328_s4, %s1524_s0 }
  0x34   : > { %p1094_p3 = pnand %p1093_p0, %p1092_p13  ;;  %p1098_p9 = scmp.lt.u32.totalorder %s1096_s11, %s1091_s6 }
  0x35   : > { %p1100_p2 = scmp.lt.u32.totalorder %s1091_s6, %s1328_s4 }
  0x36   : > { %p1095_p5 = pneg %p1094_p3  ;;  %p1099_p1 = por %p1098_p9, %p1097_p7 }
  0x38   : > { %p1101_p4 = por %p1100_p2, %p1099_p1 }
  0x3a   : > { %p1102_p6 = pnand %p1101_p4, %p1095_p5 }
  0x3c   : > { %1105 = shalt.err (!%p1102_p6)
}
  0x3d   : > { %s1106_s23 = scalar_lea.vmem %s1334_s25, 512  ;;  %s1196_s29 = smov [#allocation3]  }
  0x3e   : > { %p1107_p8 = scmp.ne.s32.totalorder %s1334_s25, %s1106_s23  ;;  %s1111_s30 = sshll.u32 %s1196_s29, 4  ;;  %s1112_s30 = int_to_ptr.vmem [resolvable:$false] %s1111_s30 }
  0x3f   : > { %s1113_s22 = scalar_lea.vmem %s1112_s30, 1024  ;;  %p1114_p3 = scmp.lt.s32.totalorder %s1334_s25, %s1112_s30 }
  0x40   : > { %p1109_p10 = pnand %p1107_p8, %p1093_p0  ;;  %p1115_p7 = scmp.lt.s32.totalorder %s1113_s22, %s1106_s23 }
  0x42   : > { %p1110_p13 = pneg %p1109_p10  ;;  %p1116_p9 = por %p1115_p7, %p1114_p3 }
  0x44   : > { %p1117_p1 = pnand %p1116_p9, %p1110_p13 }
  0x46   : > { %1120 = shalt.err (!%p1117_p1)
}
  0x47   : > { %962 = dma.hbm_to_vmem [thread:$0]  (!%p1330_p11), %s1328_s4, 512, %s1334_s25, %s1336_s5, %s1194_s8, %s1194_s8, %s1195_s9  }
  0x48   : > { %p1538_p0 = scmp.ne.s32.totalorder %s1533_s20, 0 }
  0x49   : > { %s1370_s6 = sand.u32 (!%p1538_p0), 1, %s1183_s13   ;;  %p1539_p5 = scmp.ne.s32.totalorder (!%p1538_p0), %s1531_s18, 0 }
  0x4a   : > { %174 = sbr.rel (%p1538_p0) target bundleno = 679 (0x2a7), region = 28  ;;  %s813_s7 = sshll.u32 (!%p1538_p0), %s1370_s6, 5 }
  0x4b   : > { %s177_s10 = scalar_lea.sflag (!%p1538_p0), [#allocation4], %s1370_s6  ;;  %s180_s26 = scalar_lea.vmem (!%p1538_p0), [#allocation3], %s813_s7 }
  0x51   : > { %1166 = dma.done.wait (%p1539_p5), %s177_s10, 512  }
  0x52   : > { %1168 = vsyncadd (%p1539_p5), %s177_s10, 4294966784  ;;  %p1540_p11 = scmp.eq.s32.totalorder %s1246_s16, 0 }
  0x54   : > { %1170 = dma.done.wait (%p1540_p11), [#allocation7], 7680   ;;  %p1541_p2 = pmov %p1540_p11 }
  0x55   : > { %vm213_vm0 = vcmask 261120   ;;  %v1197_v0 = vmov 0.0   ;;  %v1198_v1 = vmov 0.0|0.0   ;;  %v216_v2 = vld [vmem:[%s180_s26] sm:$0xff]  ;;  %v217_v3 = vld [vmem:[%s180_s26 + $0x8] sm:$0xff]  ;;  %v218_v4 = vld [vmem:[%s180_s26 + $0x10] sm:$0xff] }
  0x56   : > { %1172 = vsyncadd (%p1541_p2), [#allocation7], 4294959616  ;;  %214 = vst.msk [vmem:[#allocation2] sm:$0xff] %vm213_vm0, %v1197_v0  ;;  %903 = vmatprep.subr.bf16.mxu1 %v1198_v1  ;;  %v219_v5 = vld [vmem:[%s180_s26 + $0x18] sm:$0xff]  ;;  %v442_v6 = vld [vmem:[#allocation6 + $0x100] sm:$0xff]  ;;  %s1199_s18 = smov 96  }
  0x57   : > { %215 = vst.msk [vmem:[#allocation2 + $0x28] sm:$0xff] %vm213_vm0, %v1197_v0  ;;  %220 = vst.msk [vmem:[#allocation2 + $0x8] sm:$0xff] %vm213_vm0, %v216_v2  ;;  %v443_v7 = vld [vmem:[#allocation6 + $0x108] sm:$0xff]  ;;  %v444_v9 = vld [vmem:[#allocation6 + $0x110] sm:$0xff]  ;;  %s1200_s20 = smov 32   ;;  %s1201_s8 = smov 64  }
  0x58   : > { %221 = vst.msk [vmem:[#allocation2 + $0x10] sm:$0xff] %vm213_vm0, %v217_v3  ;;  %222 = vst.msk [vmem:[#allocation2 + $0x18] sm:$0xff] %vm213_vm0, %v218_v4  ;;  %v904_v8 = vpack.c.bf16 %v443_v7, %v442_v6  ;;  %v445_v10 = vld [vmem:[#allocation6 + $0x118] sm:$0xff]  ;;  %v446_v12 = vld [vmem:[#allocation6 + $0x120] sm:$0xff]  ;;  %vm383_vm1 = vcmask 523264   ;;  %vm388_vm2 = vcmask 785408  }
  0x59   : > { %223 = vst.msk [vmem:[#allocation2 + $0x20] sm:$0xff] %vm213_vm0, %v219_v5  ;;  %v907_v11 = vpack.c.bf16 %v445_v10, %v444_v9  ;;  %v447_v13 = vld [vmem:[#allocation6 + $0x128] sm:$0xff]  ;;  %v426_v14 = vld [vmem:[#allocation6 + $0x80] sm:$0xff]  ;;  %v428_v20 = vld [vmem:[#allocation6 + $0x90] sm:$0xff]  ;;  %s1458_s9 = scalar_lea.vmem [#allocation8], %s813_s7  ;;  %s826_s25 = sshll.u32 %s1246_s16, 9 }
  0x5a   : > { %905 = vmatpush1.bf16.msra.mxu1 %v904_v8  ;;  %v427_v15 = vld [vmem:[#allocation6 + $0x88] sm:$0xff]  ;;  %v410_v16 = vld [vmem:[#allocation6] sm:$0xff]  ;;  %v448_v21 = vld [vmem:[#allocation6 + $0x130] sm:$0xff]  ;;  %v910_v29 = vpack.c.bf16 %v447_v13, %v446_v12  ;;  %s700_s4 = sshll.u32 %s1458_s9, 4  ;;  %s1475_s27 = scalar_lea.hbm %s1526_s2, %s826_s25  ;;  %s1469_s4 = int_to_ptr.vmem [resolvable:$true] %s700_s4 }
  0x5b   : > { %906 = vmatprep.subr.bf16.mxu1 %v1198_v1  ;;  %v411_v17 = vld [vmem:[#allocation6 + $0x8] sm:$0xff]  ;;  %v871_v18 = vpack.c.bf16 %v427_v15, %v426_v14  ;;  %v449_v22 = vld [vmem:[#allocation6 + $0x138] sm:$0xff]  ;;  %v412_v24 = vld [vmem:[#allocation6 + $0x10] sm:$0xff]  ;;  %s684_s28 = scalar_lea.sflag [#allocation5], %s1370_s6  ;;  %s1121_s23 = scalar_lea.vmem %s1469_s4, 512 }
  0x5c   : > { %v873_v19 = vpack.c.bf16 %v411_v17, %v410_v16  ;;  %v429_v23 = vld [vmem:[#allocation6 + $0x98] sm:$0xff]  ;;  %v913_v43 = vpack.c.bf16 %v449_v22, %v448_v21  ;;  %v450_v44 = vld [vmem:[#allocation6 + $0x140] sm:$0xff]  ;;  %v451_v45 = vld [vmem:[#allocation6 + $0x148] sm:$0xff]  ;;  %p1122_p4 = scmp.ne.s32.totalorder %s1469_s4, %s1121_s23  ;;  %s1202_s29 = smov [#allocation8]  }
  0x5d   : > { %v413_v25 = vld [vmem:[#allocation6 + $0x18] sm:$0xff]  ;;  %872 = vmatprep.subr.bf16.mxu0 %v871_v18  ;;  %v875_v30 = vpack.c.bf16 %v429_v23, %v428_v20  ;;  %v916_v49 = vpack.c.bf16 %v451_v45, %v450_v44  ;;  %v452_v51 = vld [vmem:[#allocation6 + $0x150] sm:$0xff]  ;;  %v430_v53 = vld [vmem:[#allocation6 + $0xa0] sm:$0xff]  ;;  %s1125_s30 = sshll.u32 %s1202_s29, 4  ;;  %s1126_s30 = int_to_ptr.vmem [resolvable:$false] %s1125_s30 }
  0x5e   : > { %v236_v26 = vld [vmem:[#allocation2 + $0x4] sm:$0xff]  ;;  %908 = vmatpush1.bf16.msra.mxu1 %v907_v11  ;;  %874 = vmatpush3.bf16.msra.mxu0 %v873_v19  ;;  %v877_v35 = vpack.c.bf16 %v413_v25, %v412_v24  ;;  %v431_v54 = vld [vmem:[#allocation6 + $0xa8] sm:$0xff]  ;;  %v414_v58 = vld [vmem:[#allocation6 + $0x20] sm:$0xff]  ;;  %p1123_p6 = pnand %p1122_p4, %p1319_p12  ;;  %s1127_s22 = scalar_lea.vmem %s1126_s30, 1024 }
  0x5f   : > { %v252_v27 = vld [vmem:[#allocation2 + $0x8] sm:$0xff]  ;;  %v230_v34 = vld [vmem:[#allocation2 + $0x12] sm:$0xff]  ;;  %909 = vmatprep.subr.bf16.mxu1 %v1198_v1  ;;  %876 = vmatprep.subr.bf16.mxu0 %v875_v30  ;;  %v879_v57 = vpack.c.bf16 %v431_v54, %v430_v53  ;;  %v432_v63 = vld [vmem:[#allocation6 + $0xb0] sm:$0xff]  ;;  %p1128_p10 = scmp.lt.s32.totalorder %s1469_s4, %s1126_s30  ;;  %p1129_p13 = scmp.lt.s32.totalorder %s1127_s22, %s1121_s23 }
  0x60   : > { %v228_v28 = vld [vmem:[#allocation2 + $0x2] sm:$0xff]  ;;  %v1023_v31 = vpack.i.bf16 %v236_v26, %v252_v27  ;;  %v229_v33 = vld [vmem:[#allocation2 + $0xa] sm:$0xff]  ;;  %v234_v42 = vld [vmem:[#allocation2 + $0x13] sm:$0xff]  ;;  %p1124_p8 = pneg %p1123_p6 }
  0x61   : > { %v244_v32 = vld [vmem:[#allocation2 + $0x6] sm:$0xff]  ;;  %v1028_v39 = vpack.i.bf16 %v230_v34, %v229_v33  ;;  %v253_v48 = vld [vmem:[#allocation2 + $0x10] sm:$0xff]  ;;  %v415_v59 = vld [vmem:[#allocation6 + $0x28] sm:$0xff]  ;;  %p1130_p3 = por %p1129_p13, %p1128_p10 }
  0x62   : > { %v1013_v36 = vpack.i.bf16 %v228_v28, %v244_v32  ;;  %v232_v37 = vld [vmem:[#allocation2 + $0x3] sm:$0xff]  ;;  %1024 = vrot.lane.b32.xlu1 %v1023_v31, %s1199_s18  ;;  %v233_v41 = vld [vmem:[#allocation2 + $0xb] sm:$0xff]  ;;  %911 = vmatpush1.bf16.msra.mxu1 %v910_v29  ;;  %v881_v62 = vpack.c.bf16 %v415_v59, %v414_v58  ;;  %v455_v2 = vld [vmem:[#allocation6 + $0x168] sm:$0xff] }
  0x63   : > { %v248_v38 = vld [vmem:[#allocation2 + $0x7] sm:$0xff]  ;;  %912 = vmatprep.subr.bf16.mxu1 %v1198_v1  ;;  %878 = vmatpush3.bf16.msra.mxu0 %v877_v35  ;;  %v1033_v46 = vpack.i.bf16 %v234_v42, %v233_v41  ;;  %v249_v56 = vld [vmem:[#allocation2 + $0xf] sm:$0xff]  ;;  %v250_v6 = vld [vmem:[#allocation2 + $0x17] sm:$0xff]  ;;  %p1131_p7 = pnand %p1130_p3, %p1124_p8 }
  0x64   : > { %1014 = vrot.lane.b32.xlu0 %v1013_v36, %s1200_s20  ;;  %v1018_v40 = vpack.i.bf16 %v232_v37, %v248_v38  ;;  %v237_v47 = vld [vmem:[#allocation2 + $0xc] sm:$0xff]  ;;  %880 = vmatprep.subr.bf16.mxu0 %v879_v57  ;;  %v416_v4 = vld [vmem:[#allocation6 + $0x30] sm:$0xff]  ;;  %v435_v10 = vld [vmem:[#allocation6 + $0xc8] sm:$0xff] }
  0x65   : > { %v245_v50 = vld [vmem:[#allocation2 + $0xe] sm:$0xff]  ;;  %v1038_v55 = vpack.i.bf16 %v253_v48, %v237_v47  ;;  %v231_v7 = vld [vmem:[#allocation2 + $0x1a] sm:$0xff]  ;;  %v257_v12 = vld [vmem:[#allocation2 + $0x22] sm:$0xff] }
  0x66   : > { %1029 = vrot.lane.b32.xlu1 %v1028_v39, %s1200_s20  ;;  %914 = vmatpush1.bf16.msra.mxu1 %v913_v43  ;;  %v453_v52 = vld [vmem:[#allocation6 + $0x158] sm:$0xff]  ;;  %v454_v61 = vld [vmem:[#allocation6 + $0x160] sm:$0xff]  ;;  %v419_v15 = vld [vmem:[#allocation6 + $0x48] sm:$0xff]  ;;  %v1048_v24 = vpack.i.bf16 %v257_v12, %v231_v7 }
  0x67   : > { %915 = vmatprep.subr.bf16.mxu1 %v1198_v1  ;;  %v919_v60 = vpack.c.bf16 %v453_v52, %v452_v51  ;;  %v433_v0 = vld [vmem:[#allocation6 + $0xb8] sm:$0xff]  ;;  %882 = vmatpush3.bf16.msra.mxu0 %v881_v62  ;;  %v434_v9 = vld [vmem:[#allocation6 + $0xc0] sm:$0xff]  ;;  %v922_v17 = vpack.c.bf16 %v455_v2, %v454_v61  ;;  %v436_v18 = vld [vmem:[#allocation6 + $0xd0] sm:$0xff] }
  0x68   : > { %1019 = vrot.lane.b32.xlu0 %v1018_v40, %s1201_s8  ;;  %v883_v3 = vpack.c.bf16 %v433_v0, %v432_v63  ;;  %v417_v5 = vld [vmem:[#allocation6 + $0x38] sm:$0xff]  ;;  %v246_v11 = vld [vmem:[#allocation2 + $0x16] sm:$0xff]  ;;  %v887_v13 = vpack.c.bf16 %v435_v10, %v434_v9  ;;  %v456_v21 = vld [vmem:[#allocation6 + $0x170] sm:$0xff] }
  0x69   : > { %v885_v8 = vpack.c.bf16 %v417_v5, %v416_v4  ;;  %v418_v14 = vld [vmem:[#allocation6 + $0x40] sm:$0xff]  ;;  %v437_v19 = vld [vmem:[#allocation6 + $0xd8] sm:$0xff]  ;;  %v254_v20 = vld [vmem:[#allocation2 + $0x18] sm:$0xff] }
  0x6a   : > { %1034 = vrot.lane.b32.xlu1 %v1033_v46, %s1201_s8  ;;  %917 = vmatpush1.bf16.msra.mxu1 %v916_v49  ;;  %v238_v16 = vld [vmem:[#allocation2 + $0x14] sm:$0xff]  ;;  %v457_v22 = vld [vmem:[#allocation6 + $0x178] sm:$0xff]  ;;  %v889_v23 = vpack.c.bf16 %v419_v15, %v418_v14  ;;  %v891_v26 = vpack.c.bf16 %v437_v19, %v436_v18  ;;  %v420_v27 = vld [vmem:[#allocation6 + $0x50] sm:$0xff] }
  0x6b   : > { %918 = vmatprep.subr.bf16.mxu1 %v1198_v1  ;;  %884 = vmatprep.subr.bf16.mxu0 %v883_v3  ;;  %v235_v25 = vld [vmem:[#allocation2 + $0x1b] sm:$0xff]  ;;  %v421_v28 = vld [vmem:[#allocation6 + $0x58] sm:$0xff]  ;;  %v1043_v29 = vpack.i.bf16 %v254_v20, %v238_v16  ;;  %v925_v31 = vpack.c.bf16 %v457_v22, %v456_v21  ;;  %v438_v32 = vld [vmem:[#allocation6 + $0xe0] sm:$0xff] }
  0x6c   : > { %317 = vrot.lane.b32.xlu0 %v245_v50, %s1200_s20  ;;  %886 = vmatpush3.bf16.msra.mxu0 %v885_v8  ;;  %v258_v30 = vld [vmem:[#allocation2 + $0x23] sm:$0xff]  ;;  %v439_v33 = vld [vmem:[#allocation6 + $0xe8] sm:$0xff]  ;;  %v458_v34 = vld [vmem:[#allocation6 + $0x180] sm:$0xff]  ;;  %v893_v36 = vpack.c.bf16 %v421_v28, %v420_v27 }
  0x6d   : > { %888 = vmatprep.subr.bf16.mxu0 %v887_v13  ;;  %v459_v35 = vld [vmem:[#allocation6 + $0x188] sm:$0xff]  ;;  %v1053_v37 = vpack.i.bf16 %v258_v30, %v235_v25  ;;  %v895_v39 = vpack.c.bf16 %v439_v33, %v438_v32  ;;  %v422_v40 = vld [vmem:[#allocation6 + $0x60] sm:$0xff]  ;;  %v255_v42 = vld [vmem:[#allocation2 + $0x20] sm:$0xff] }
  0x6e   : > { %1039 = vrot.lane.b32.xlu1 %v1038_v55, %s1199_s18  ;;  %920 = vmatpush1.bf16.msra.mxu1 %v919_v60  ;;  %v239_v38 = vld [vmem:[#allocation2 + $0x1c] sm:$0xff]  ;;  %v928_v43 = vpack.c.bf16 %v459_v35, %v458_v34  ;;  %v441_v45 = vld [vmem:[#allocation6 + $0xf8] sm:$0xff]  ;;  %v466_v3 = vld [vmem:[#allocation6 + $0x1c0] sm:$0xff] }
  0x6f   : > { %921 = vmatprep.subr.bf16.mxu1 %v1198_v1  ;;  %v423_v41 = vld [vmem:[#allocation6 + $0x68] sm:$0xff]  ;;  %v440_v44 = vld [vmem:[#allocation6 + $0xf0] sm:$0xff]  ;;  %v461_v48 = vld [vmem:[#allocation6 + $0x198] sm:$0xff]  ;;  %v1058_v50 = vpack.i.bf16 %v255_v42, %v239_v38 }
  0x70   : > { %333 = vrot.lane.b32.xlu0 %v249_v56, %s1201_s8  ;;  %890 = vmatpush3.bf16.msra.mxu0 %v889_v23  ;;  %v247_v46 = vld [vmem:[#allocation2 + $0x1e] sm:$0xff]  ;;  %v897_v49 = vpack.c.bf16 %v423_v41, %v422_v40  ;;  %v899_v51 = vpack.c.bf16 %v441_v45, %v440_v44  ;;  %v425_v53 = vld [vmem:[#allocation6 + $0x78] sm:$0xff]  ;;  %v462_v56 = vld [vmem:[#allocation6 + $0x1a0] sm:$0xff] }
  0x71   : > { %892 = vmatprep.subr.bf16.mxu0 %v891_v26  ;;  %v460_v47 = vld [vmem:[#allocation6 + $0x190] sm:$0xff]  ;;  %v463_v57 = vld [vmem:[#allocation6 + $0x1a8] sm:$0xff]  ;;  %v465_v63 = vld [vmem:[#allocation6 + $0x1b8] sm:$0xff] }
  0x72   : > { %335 = vrot.lane.b32.xlu1 %v250_v6, %s1201_s8  ;;  %923 = vmatpush1.bf16.msra.mxu1 %v922_v17  ;;  %v424_v52 = vld [vmem:[#allocation6 + $0x70] sm:$0xff]  ;;  %v931_v54 = vpack.c.bf16 %v461_v48, %v460_v47  ;;  %v934_v60 = vpack.c.bf16 %v463_v57, %v462_v56  ;;  %v467_v4 = vld [vmem:[#allocation6 + $0x1c8] sm:$0xff]  ;;  %v469_v7 = vld [vmem:[#allocation6 + $0x1d8] sm:$0xff] }
  0x73   : > { %924 = vmatprep.subr.bf16.mxu1 %v1198_v1  ;;  %v251_v55 = vld [vmem:[#allocation2 + $0x1f] sm:$0xff]  ;;  %v901_v58 = vpack.c.bf16 %v425_v53, %v424_v52  ;;  %v262_v59 = vld [vmem:[#allocation2 + $0x27] sm:$0xff]  ;;  %v940_v5 = vpack.c.bf16 %v467_v4, %v466_v3  ;;  %v242_v41 = vld [vmem:[#allocation2 + $0x15] sm:$0xff] }
  0x74   : > { %319 = vrot.lane.b32.xlu0 %v246_v11, %s1200_s20  ;;  %894 = vmatpush3.bf16.msra.mxu0 %v893_v36  ;;  %v261_v61 = vld [vmem:[#allocation2 + $0x26] sm:$0xff] }
  0x75   : > { %896 = vmatprep.subr.bf16.mxu0 %v895_v39  ;;  %v464_v62 = vld [vmem:[#allocation6 + $0x1b0] sm:$0xff]  ;;  %v225_v26 = vld [vmem:[#allocation2 + $0x9] sm:$0xff] }
  0x76   : > { %1049 = vrot.lane.b32.xlu1 %v1048_v24, %s1200_s20  ;;  %926 = vmatpush1.bf16.msra.mxu1 %v925_v31  ;;  %v937_v0 = vpack.c.bf16 %v465_v63, %v464_v62  ;;  %v259_v2 = vld [vmem:[#allocation2 + $0x24] sm:$0xff]  ;;  %v241_v31 = vld [vmem:[#allocation2 + $0xd] sm:$0xff] }
  0x77   : > { %927 = vmatprep.subr.bf16.mxu1 %v1198_v1  ;;  %v468_v6 = vld [vmem:[#allocation6 + $0x1d0] sm:$0xff] }
  0x78   : > { %1044 = vrot.lane.b32.xlu0 %v1043_v29, %s1199_s18  ;;  %898 = vmatpush3.bf16.msra.mxu0 %v897_v49  ;;  %v943_v8 = vpack.c.bf16 %v469_v7, %v468_v6  ;;  %v240_v14 = vld [vmem:[#allocation2 + $0x5] sm:$0xff]  ;;  %v243_v63 = vld [vmem:[#allocation2 + $0x1d] sm:$0xff] }
  0x79   : > { %900 = vmatprep.subr.bf16.mxu0 %v899_v51  ;;  %v224_v15 = vld [vmem:[#allocation2 + $0x1] sm:$0xff] }
  0x7a   : > { %1054 = vrot.lane.b32.xlu1 %v1053_v37, %s1201_s8  ;;  %929 = vmatpush1.bf16.msra.mxu1 %v928_v43 }
  0x7b   : > { %930 = vmatprep.subr.bf16.mxu1 %v1198_v1 }
  0x7c   : > { %321 = vrot.lane.b32.xlu0 %v247_v46, %s1200_s20  ;;  %902 = vmatpush3.bf16.msra.mxu0 %v901_v58  ;;  %v226_v46 = vld [vmem:[#allocation2 + $0x11] sm:$0xff] }
  0x7e   : > { %1059 = vrot.lane.b32.xlu1 %v1058_v50, %s1199_s18  ;;  %932 = vmatpush1.bf16.msra.mxu1 %v931_v54 }
  0x7f   : > { %933 = vmatprep.subr.bf16.mxu1 %v1198_v1 }
  0x80   : > { %337 = vrot.lane.b32.xlu0 %v251_v55, %s1201_s8 }
  0x82   : > { %376 = vrot.lane.b32.xlu1 %v262_v59, %s1201_s8  ;;  %935 = vmatpush1.bf16.msra.mxu1 %v934_v60  ;;  %v227_v60 = vld [vmem:[#allocation2 + $0x19] sm:$0xff] }
  0x83   : > { %936 = vmatprep.subr.bf16.mxu1 %v1198_v1 }
  0x84   : > { %372 = vrot.lane.b32.xlu0 %v261_v61, %s1200_s20 }
  0x86   : > { %938 = vmatpush1.bf16.msra.mxu1 %v937_v0 }
  0x87   : > { %939 = vmatprep.subr.bf16.mxu1 %v1198_v1 }
  0x88   : > { %368 = vrot.lane.b32.xlu0 %v259_v2, %s1199_s18 }
  0x8a   : > { %941 = vmatpush1.bf16.msra.mxu1 %v940_v5 }
  0x8b   : > { %942 = vmatprep.subr.bf16.mxu1 %v1198_v1 }
  0x8e   : > { %944 = vmatpush1.bf16.msra.mxu1 %v943_v8 }
  0xd4   : > { %v1025_v9 = vpop.permute.xlu1 %1024 }
  0xd5   : > { %v1027_v17 = vunpack.i.h.bf16 %v1025_v9  ;;  %v1026_v20 = vunpack.i.l.bf16 %v1025_v9 }
  0xd6   : > { %v1015_v10 = vpop.permute.xlu0 %1014 }
  0xd7   : > { %v1017_v11 = vunpack.i.h.bf16 %v1015_v10  ;;  %v1016_v12 = vunpack.i.l.bf16 %v1015_v10  ;;  %v260_v10 = vld [vmem:[#allocation2 + $0x25] sm:$0xff] }
  0xd8   : > { %v1030_v13 = vpop.permute.xlu1 %1029 }
  0xd9   : > { %v1031_v21 = vunpack.i.l.bf16 %v1030_v13  ;;  %v393_v22 = vsel %vm213_vm0, %v240_v14, %v1016_v12  ;;  %v379_v1 = vsel %vm213_vm0, %v224_v15, %v1017_v11  ;;  %v1032_v43 = vunpack.i.h.bf16 %v1030_v13  ;;  %v256_v13 = vld [vmem:[#allocation2 + $0x21] sm:$0xff] }
  0xda   : > { %v1020_v16 = vpop.permute.xlu0 %1019 }
  0xdb   : > { %v1022_v18 = vunpack.i.h.bf16 %v1020_v16  ;;  %v1021_v19 = vunpack.i.l.bf16 %v1020_v16  ;;  %v380_v32 = vsel %vm213_vm0, %v225_v26, %v1031_v21  ;;  %v381_v51 = vsel %vm213_vm0, %v226_v46, %v1032_v43 }
  0xdc   : > { %v1035_v23 = vpop.permute.xlu1 %1034 }
  0xdd   : > { %v397_v24 = vsel %vm383_vm1, %v393_v22, %v1021_v19  ;;  %v384_v25 = vsel %vm383_vm1, %v379_v1, %v1022_v18  ;;  %v1036_v30 = vunpack.i.l.bf16 %v1035_v23  ;;  %v1037_v48 = vunpack.i.h.bf16 %v1035_v23 }
  0xde   : > { %v318_v27 = vpop.permute.xlu0 %317  ;;  %v401_v28 = vsel %vm388_vm2, %v397_v24, %v1026_v20  ;;  %v389_v29 = vsel %vm388_vm2, %v384_v25, %v1027_v17 }
  0xdf   : > { %546 = vmatprep.mubr.f32.mxu0 %v401_v28  ;;  %v394_v34 = vsel %vm213_vm0, %v241_v31, %v318_v27  ;;  %v385_v39 = vsel %vm383_vm1, %v380_v32, %v1036_v30  ;;  %v386_v56 = vsel %vm383_vm1, %v381_v51, %v1037_v48 }
  0xe0   : > { %547 = vmatmul.mubr.f32.vlgmr.msra.gmra.mrb[0].mxu0 %v389_v29  ;;  %v1040_v33 = vpop.permute.xlu1 %1039 }
  0xe1   : > { %v1042_v35 = vunpack.i.h.bf16 %v1040_v33  ;;  %v1041_v36 = vunpack.i.l.bf16 %v1040_v33 }
  0xe2   : > { %v334_v37 = vpop.permute.xlu0 %333 }
  0xe3   : > { %v398_v38 = vsel %vm383_vm1, %v394_v34, %v334_v37  ;;  %v390_v40 = vsel %vm388_vm2, %v385_v39, %v1041_v36 }
  0xe4   : > { %816 = vmatprep.mubr.msk.f32.mxu1 %vm388_vm2, %v398_v38  ;;  %v402_v42 = vsel %vm388_vm2, %v398_v38, %v1042_v35  ;;  %v336_v44 = vpop.permute.xlu1 %335 }
  0xe5   : > { %632 = vmatmul.mubr.f32.vlgmr.msra.gmra.mrb[0].mxu1 %v390_v40  ;;  %551 = vmatprep.mubr.f32.mxu0 %v402_v42 }
  0xe6   : > { %v320_v45 = vpop.permute.xlu0 %319  ;;  %552 = vmatmul.mubr.f32.gmra.mrb[2].mxu0 %v390_v40 }
  0xe7   : > { %v395_v47 = vsel %vm213_vm0, %v242_v41, %v320_v45 }
  0xe8   : > { %v399_v49 = vsel %vm383_vm1, %v395_v47, %v336_v44  ;;  %v1050_v50 = vpop.permute.xlu1 %1049 }
  0xe9   : > { %817 = vmatprep.mubr.msk.f32.mxu1 %vm388_vm2, %v399_v49  ;;  %v1051_v55 = vunpack.i.l.bf16 %v1050_v50  ;;  %v1052_v7 = vunpack.i.h.bf16 %v1050_v50 }
  0xea   : > { %v1045_v52 = vpop.permute.xlu0 %1044 }
  0xeb   : > { %v1047_v53 = vunpack.i.h.bf16 %v1045_v52  ;;  %v1046_v54 = vunpack.i.l.bf16 %v1045_v52  ;;  %v382_v0 = vsel %vm213_vm0, %v227_v60, %v1051_v55  ;;  %v405_v18 = vsel %vm213_vm0, %v256_v13, %v1052_v7 }
  0xec   : > { %v1055_v57 = vpop.permute.xlu1 %1054 }
  0xed   : > { %v403_v58 = vsel %vm388_vm2, %v399_v49, %v1047_v53  ;;  %v391_v59 = vsel %vm388_vm2, %v386_v56, %v1046_v54  ;;  %v1056_v62 = vunpack.i.l.bf16 %v1055_v57  ;;  %v1057_v15 = vunpack.i.h.bf16 %v1055_v57 }
  0xee   : > { %v322_v61 = vpop.permute.xlu0 %321  ;;  %556 = vmatprep.mubr.f32.mxu0 %v403_v58  ;;  %637 = vmatmul.mubr.f32.gmra.mrb[2].mxu1 %v391_v59 }
  0xef   : > { %557 = vmatmul.mubr.f32.gmra.mrb[4].mxu0 %v391_v59  ;;  %v396_v3 = vsel %vm213_vm0, %v243_v63, %v322_v61  ;;  %v387_v9 = vsel %vm383_vm1, %v382_v0, %v1056_v62  ;;  %v406_v21 = vsel %vm383_vm1, %v405_v18, %v1057_v15 }
  0xf0   : > { %v1060_v2 = vpop.permute.xlu1 %1059 }
  0xf1   : > { %v1062_v4 = vunpack.i.h.bf16 %v1060_v2  ;;  %v1061_v5 = vunpack.i.l.bf16 %v1060_v2 }
  0xf2   : > { %v338_v6 = vpop.permute.xlu0 %337 }
  0xf3   : > { %v400_v8 = vsel %vm383_vm1, %v396_v3, %v338_v6  ;;  %v392_v12 = vsel %vm388_vm2, %v387_v9, %v1061_v5 }
  0xf4   : > { %818 = vmatprep.mubr.msk.f32.mxu1 %vm388_vm2, %v400_v8  ;;  %v404_v11 = vsel %vm388_vm2, %v400_v8, %v1062_v4  ;;  %v377_v14 = vpop.permute.xlu1 %376 }
  0xf5   : > { %561 = vmatprep.mubr.f32.mxu0 %v404_v11  ;;  %642 = vmatmul.mubr.f32.gmra.mrb[4].mxu1 %v392_v12 }
  0xf6   : > { %v373_v16 = vpop.permute.xlu0 %372  ;;  %562 = vmatmul.mubr.f32.gmra.mrb[6].mxu0 %v392_v12 }
  0xf7   : > { %v408_v17 = vsel %vm213_vm0, %v260_v10, %v373_v16 }
  0xf8   : > { %v409_v19 = vsel %vm383_vm1, %v408_v17, %v377_v14 }
  0xf9   : > { %819 = vmatprep.mubr.msk.f32.mxu1 %vm388_vm2, %v409_v19 }
  0xfa   : > { %v369_v20 = vpop.permute.xlu0 %368 }
  0xfb   : > { %v407_v22 = vsel %vm388_vm2, %v406_v21, %v369_v20 }
  0xfc   : > { %647 = vmatmul.mubr.f32.gmra.mrb[6].mxu1 %v407_v22 }
 0x1b3   : > { %v859_v1 = vpop.f32.mrb[0].mxu0 }
 0x1b4   : > { %v860_v23 = vpop.f32.mrb[1].mxu0 }
 0x1b5   : > { %v861_v24 = vadd.f32 %v860_v23, %v859_v1 }
 0x1b8   : > { %v633_v25 = vpop.f32.mrb[0].mxu1 }
 0x1b9   : > { %v634_v26 = vadd.f32 %v861_v24, %v633_v25  ;;  %v862_v27 = vpop.f32.mrb[2].mxu0  ;;  %v635_v28 = vpop.f32.mrb[1].mxu1 }
 0x1ba   : > { %v863_v29 = vpop.f32.mrb[3].mxu0 }
 0x1bb   : > { %652 = vst [vmem:[%s1458_s9] sm:$0xff] %v634_v26  ;;  %v864_v30 = vadd.f32 %v863_v29, %v862_v27  ;;  %vm656_vm3 = vcmp.lt.f32.partialorder %v634_v26, 0.6 }
 0x1bc   : > { %v660_v35 = vsel %vm656_vm3, %v634_v26, -inf }
 0x1bd   : > { %v664_v39 = vsel %vm213_vm0, %v660_v35, -inf }
 0x1c1   : > { %v638_v31 = vpop.f32.mrb[2].mxu1 }
 0x1c2   : > { %v639_v32 = vadd.f32 %v864_v30, %v638_v31  ;;  %v865_v33 = vpop.f32.mrb[4].mxu0  ;;  %v640_v34 = vpop.f32.mrb[3].mxu1 }
 0x1c3   : > { %v866_v36 = vpop.f32.mrb[5].mxu0 }
 0x1c4   : > { %653 = vst [vmem:[%s1458_s9 + $0x8] sm:$0xff] %v639_v32  ;;  %vm657_vm4 = vcmp.lt.f32.partialorder %v639_v32, 0.6  ;;  %v867_v37 = vadd.f32 %v866_v36, %v865_v33 }
 0x1c5   : > { %v661_v38 = vsel %vm657_vm4, %v639_v32, -inf }
 0x1c6   : > { %v665_v40 = vsel %vm213_vm0, %v661_v38, -inf }
 0x1c7   : > { %v668_v41 = vmax.f32 %v664_v39, %v665_v40 }
 0x1c8   : > { %v643_v42 = vpop.f32.mrb[4].mxu1 }
 0x1c9   : > { %v644_v43 = vadd.f32 %v867_v37, %v643_v42  ;;  %v868_v44 = vpop.f32.mrb[6].mxu0  ;;  %v645_v45 = vpop.f32.mrb[5].mxu1 }
 0x1ca   : > { %v869_v46 = vpop.f32.mrb[7].mxu0 }
 0x1cb   : > { %654 = vst [vmem:[%s1458_s9 + $0x10] sm:$0xff] %v644_v43  ;;  %v870_v47 = vadd.f32 %v869_v46, %v868_v44  ;;  %vm658_vm5 = vcmp.lt.f32.partialorder %v644_v43, 0.6 }
 0x1cc   : > { %v662_v51 = vsel %vm658_vm5, %v644_v43, -inf }
 0x1cd   : > { %v666_v53 = vsel %vm213_vm0, %v662_v51, -inf }
 0x1cf   : > { %v648_v48 = vpop.f32.mrb[6].mxu1 }
 0x1d0   : > { %v649_v49 = vadd.f32 %v870_v47, %v648_v48  ;;  %v650_v50 = vpop.f32.mrb[7].mxu1 }
 0x1d2   : > { %655 = vst [vmem:[%s1458_s9 + $0x18] sm:$0xff] %v649_v49  ;;  %vm659_vm6 = vcmp.lt.f32.partialorder %v649_v49, 0.6 }
 0x1d3   : > { %v663_v52 = vsel %vm659_vm6, %v649_v49, -inf }
 0x1d4   : > { %v667_v54 = vsel %vm213_vm0, %v663_v52, -inf }
 0x1d5   : > { %v669_v55 = vmax.f32 %v666_v53, %v667_v54 }
 0x1d7   : > { %v670_v56 = vmax.f32 %v668_v41, %v669_v55 }
 0x1d9   : > { %671 = vmax.xlane.f32.xlu1 %v670_v56 }
 0x1da   : > { %1134 = shalt.err (!%p1131_p7)
}
 0x1db   : > { %s1135_s7 = scalar_lea.hbm %s1475_s27, 512  ;;  %s1139_s18 = scalar_lea.hbm %s1526_s2, 1024 }
 0x1dc   : > { %p1136_p9 = scmp.ne.s32.totalorder %s1475_s27, %s1135_s7  ;;  %p1140_p5 = scmp.lt.u32.totalorder %s1475_s27, %s1526_s2 }
 0x1dd   : > { %p1141_p11 = scmp.lt.u32.totalorder %s1139_s18, %s1135_s7  ;;  %p1143_p4 = scmp.lt.u32.totalorder %s1135_s7, %s1475_s27 }
 0x1de   : > { %p1137_p1 = pnand %p1136_p9, %p1319_p12 }
 0x1df   : > { %p1142_p2 = por %p1141_p11, %p1140_p5 }
 0x1e0   : > { %p1138_p0 = pneg %p1137_p1 }
 0x1e1   : > { %p1144_p6 = por %p1143_p4, %p1142_p2 }
 0x1e3   : > { %p1145_p8 = pnand %p1144_p6, %p1138_p0 }
 0x1e5   : > { %1148 = shalt.err (!%p1145_p8)
}
 0x1e6   : > { %s1203_s9 = smov 128   ;;  %s1204_s25 = smov 8   ;;  %vm681_vm7 = vcmask 0  }
 0x1e7   : > { %953 = dma.vmem_to_hbm [thread:$0]  (%p1319_p12), %s1469_s4, 512, %s1475_s27, %s684_s28, %s1203_s9, %s1203_s9, %s1204_s25  }
 0x1e8   : > { %p210_p10 = scmp.lt.s32.totalorder %s1246_s16, 1 }
 0x1ea   : > { %s1549_s16 = smov (!%p210_p10, %s1246_s16), 1 }
 0x1eb   : > { %s212_s23 = scalar_lea.vmem %s1527_s3, %s1549_s16 }
 0x266   : > { %v672_v57 = vpop.xlane.xlu1 %671 }
 0x267   : > { %v673_v58 = vrot.slane %v672_v57, 4 }
 0x269   : > { %v674_v59 = vmax.f32 %v672_v57, %v673_v58 }
 0x26b   : > { %v675_v60 = vrot.slane %v674_v59, 2 }
 0x26d   : > { %v676_v61 = vmax.f32 %v674_v59, %v675_v60 }
 0x26f   : > { %v677_v62 = vrot.slane %v676_v61, 1 }
 0x271   : > { %v678_v63 = vmax.f32 %v676_v61, %v677_v62 }
 0x273   : > { %945 = vpush %v678_v63 }
 0x2a4   : > { %s946_s29 = spop %945 }
 0x2a5   : > { %v680_v0 = vstv %s946_s29 }
 0x2a6   : > { %682 = vst.msk [vmem:[%s212_s23] sm:$0x1] %vm681_vm7, %v680_v0 }
 0x2a7 PF: > { %s718_s21 = sand.u32 1, %s1179_s12   ;;  %p1542_p12 = scmp.ne.s32.totalorder %s1532_s19, 0 }
 0x2a8   : > { %p1543_p13 = scmp.ge.s32.totalorder %s1191_s15, 2  ;;  %s719_s6 = scalar_lea.sflag [#allocation5], %s718_s21 }
 0x2aa   : > { %p964_p3 = pnand %p1543_p13, %p1542_p12 }
 0x2ac   : > { %1174 = dma.done.wait (!%p964_p3), %s719_s6, 512  }
 0x2ad   : > { %1176 = vsyncadd (!%p964_p3), %s719_s6, 4294966784  ;;  %p18_p7 = scmp.ge.s32.totalorder %s1281_s24, 4   ;;  %s1544_s12 = smov %s1183_s13 }
 0x2ae   : > { %s1545_s13 = smov %s1187_s14  ;;  %s1546_s14 = smov %s1315_s17 }
 0x2af   : > { %s1547_s15 = smov %s1281_s24  ;;  %20 = sbr.rel (!%p18_p7) target bundleno = 6 (0x6), region = 89 }
 0x2b6   :  { %730 = vsyncpa [#allocation4], 1 }
 0x2b7   :  { %732 = vsyncpa [#allocation4 + $0x1], 1 }
 0x2b8   :  { %733 = vsyncpa [#allocation7], 1 }
 0x2b9   :  { %734 = vsyncpa [#allocation5], 1 }
 0x2ba   :  { %736 = vsyncpa [#allocation5 + $0x1], 1 }

</bundles_post_ra>
